<compile_context>
chip_gen: v6e
topology: v6e:2x2x1
jax: 0.10.0
libtpu: 0.0.40
codegen_flags: <defaults>
</compile_context>

<pallas_src>
import functools
import math

import jax
import jax.numpy as jnp
from jax.experimental import pallas as pl
from jax.experimental.pallas import tpu as pltpu


def _round_up(x, m):
    return (x + m - 1) // m * m


# ----------------------------- Pallas kernel ------------------------------ #
def _mlp_kernel(x_ref, t_ref, w1x_ref, w1t_ref, b1_ref, w2_ref, b2_ref, o_ref):
    # x_ref  : (TB, input_dim)       t_ref : (TB, 1)
    # w1x_ref: (input_dim, hidden)   w1t_ref, b1_ref : (1, hidden)
    # w2_ref : (hidden, out_pad)     b2_ref : (1, out_pad)
    # o_ref  : (TB, out_pad)
    h = jnp.dot(x_ref[...], w1x_ref[...], preferred_element_type=jnp.float32)
    # Rank-1 time column + bias on the VPU; keeps the MXU contraction at K=64.
    h = h + t_ref[...] * w1t_ref[...] + b1_ref[...]
    h = jnp.maximum(h, 0.0)
    out = jnp.dot(h, w2_ref[...], preferred_element_type=jnp.float32) + b2_ref[...]
    o_ref[...] = out.astype(o_ref.dtype)


def _pick_batch_tile(batch, batch_tile):
    """Batch-tile heuristic: big enough to amortize per-step overhead, but at
    least two grid steps when the batch allows it (v7x megacore split)."""
    if batch_tile is not None:
        tb = _round_up(batch_tile, 8)
    else:
        tb = min(4096, _round_up(batch, 8))
        if batch >= 16:
            tb = min(tb, _round_up((batch + 1) // 2, 8))
    return max(tb, 8)


def mlp_pallas(x, t, w1x, w1t, b1, w2_pad, b2_pad, *, hidden, out_pad,
               batch_tile=None):
    """Fused (linear -> relu -> linear) over a pipelined batch grid."""
    B, in_dim = x.shape
    tb = _pick_batch_tile(B, batch_tile)
    grid = (pl.cdiv(B, tb),)

    out = pl.pallas_call(
        _mlp_kernel,
        out_shape=jax.ShapeDtypeStruct((B, out_pad), jnp.float32),
        grid=grid,
        in_specs=[
            pl.BlockSpec((tb, in_dim), lambda i: (i, 0)),       # x (tiled on batch)
            pl.BlockSpec((tb, 1), lambda i: (i, 0)),            # t (tiled on batch)
            pl.BlockSpec((in_dim, hidden), lambda i: (0, 0)),   # w1x (VMEM-resident)
            pl.BlockSpec((1, hidden), lambda i: (0, 0)),        # w1t (resident)
            pl.BlockSpec((1, hidden), lambda i: (0, 0)),        # b1  (resident)
            pl.BlockSpec((hidden, out_pad), lambda i: (0, 0)),  # w2  (resident)
            pl.BlockSpec((1, out_pad), lambda i: (0, 0)),       # b2  (resident)
        ],
        out_specs=pl.BlockSpec((tb, out_pad), lambda i: (i, 0)),
        compiler_params=pltpu.CompilerParams(
            dimension_semantics=("parallel",),  # megacore batch split on v7x
        ),
    )(x, t, w1x, w1t, b1, w2_pad, b2_pad)
    return out


# --------------------------- Module-level wrapper -------------------------- #
class MLPParams:
    """Parameters mirroring nn.Linear default init, stored kernel-friendly."""

    def __init__(self, key, input_dim=64, output_dim=10, hidden_dims=(64,),
                 num_timesteps=500):
        assert len(hidden_dims) == 1, "fused kernel covers one hidden layer (module default)"
        hidden = hidden_dims[0]
        self.input_dim = input_dim
        self.hidden = hidden
        self.output_dim = output_dim
        self.num_timesteps = num_timesteps
        # Narrow padded output width (16 >= 10); block last dim == full array
        # dim, so the (8,128) rule is satisfied without 128-lane padding.
        self.out_pad = _round_up(output_dim, 8)

        key, kw1, kb1, kw2, kb2 = jax.random.split(key, 5)

        # Layer 1: (input_dim + 1) -> hidden, stored (in, out) so kernel does x @ W.
        fan1 = input_dim + 1
        bound1 = 1.0 / math.sqrt(fan1)
        w1 = jax.random.uniform(kw1, (fan1, hidden), jnp.float32, -bound1, bound1)
        b1 = jax.random.uniform(kb1, (hidden,), jnp.float32, -bound1, bound1)

        # Layer 2: hidden -> output_dim.
        bound2 = 1.0 / math.sqrt(hidden)
        w2 = jax.random.uniform(kw2, (hidden, output_dim), jnp.float32, -bound2, bound2)
        b2 = jax.random.uniform(kb2, (output_dim,), jnp.float32, -bound2, bound2)

        # Kernel-friendly layout: split out the time row; zero-pad output cols.
        self.w1x = w1[:input_dim]                      # (input_dim, hidden)
        self.w1t = w1[input_dim:]                      # (1, hidden)
        self.b1 = b1.reshape(1, hidden)                # (1, hidden)
        self.w2_pad = jnp.zeros((hidden, self.out_pad), jnp.float32).at[:, :output_dim].set(w2)
        self.b2_pad = jnp.zeros((1, self.out_pad), jnp.float32).at[0, :output_dim].set(b2)

        # Unpadded copies for the pure-JAX reference.
        self.w1, self.b1_flat, self.w2, self.b2 = w1, b1, w2, b2


def mlp_forward(params: MLPParams, x, time, *, batch_tile=None):
    """Matches MLP.forward: returns [out of shape (B, 1, output_dim), None]."""
    B = x.shape[0]
    x = x.reshape(B, -1).astype(jnp.float32)                       # x.view(B, -1)
    t = (time.astype(jnp.float32) / params.num_timesteps).reshape(-1, 1)
    out = mlp_pallas(x, t, params.w1x, params.w1t, params.b1,
                     params.w2_pad, params.b2_pad,
                     hidden=params.hidden, out_pad=params.out_pad,
                     batch_tile=batch_tile)
    out = out[:, :params.output_dim]
    return [out.reshape(B, 1, params.output_dim), None]


# ------------------------------ reference --------------------------------- #
def mlp_reference(params: MLPParams, x, time):
    B = x.shape[0]
    x = x.reshape(B, -1).astype(jnp.float32)
    t = (time.astype(jnp.float32) / params.num_timesteps).reshape(-1, 1)
    h = jnp.concatenate([x, t], axis=1)
    h = jnp.maximum(h @ params.w1 + params.b1_flat, 0.0)
    h = h @ params.w2 + params.b2
    return h.reshape(B, 1, params.output_dim)


if __name__ == "__main__":
    key = jax.random.PRNGKey(0)
    kp, kx, kt, kx2, kt2 = jax.random.split(key, 5)

    # Small shapes consistent with the module defaults.
    batch = 8
    input_dim = 64
    output_dim = 10
    hidden_dims = (64,)
    num_timesteps = 500

    params = MLPParams(kp, input_dim=input_dim, output_dim=output_dim,
                       hidden_dims=hidden_dims, num_timesteps=num_timesteps)

    x = jax.random.normal(kx, (batch, input_dim), jnp.float32)
    time = jax.random.randint(kt, (batch,), 0, num_timesteps).astype(jnp.float32)

    out, aux = mlp_forward(params, x, time)
    out = jax.block_until_ready(out)
    assert out.shape == (batch, 1, output_dim), out.shape
    assert aux is None
    ref = mlp_reference(params, x, time)
    assert jnp.allclose(out, ref, atol=1e-5, rtol=1e-5), \
        f"max abs err {jnp.max(jnp.abs(out - ref))}"

    # Second check: multi-step grid with a ragged trailing block (no host pad).
    batch2 = 200
    x2 = jax.random.normal(kx2, (batch2, input_dim), jnp.float32)
    time2 = jax.random.randint(kt2, (batch2,), 0, num_timesteps).astype(jnp.float32)
    out2, _ = mlp_forward(params, x2, time2, batch_tile=64)
    out2 = jax.block_until_ready(out2)
    ref2 = mlp_reference(params, x2, time2)
    assert out2.shape == (batch2, 1, output_dim), out2.shape
    assert jnp.allclose(out2, ref2, atol=1e-5, rtol=1e-5), \
        f"max abs err {jnp.max(jnp.abs(out2 - ref2))}"

    # Third check: default tile heuristic on a larger, non-multiple batch.
    batch3 = 1000
    x3 = jax.random.normal(kx, (batch3, input_dim), jnp.float32)
    time3 = jax.random.randint(kt, (batch3,), 0, num_timesteps).astype(jnp.float32)
    out3, _ = mlp_forward(params, x3, time3)
    out3 = jax.block_until_ready(out3)
    ref3 = mlp_reference(params, x3, time3)
    assert jnp.allclose(out3, ref3, atol=1e-5, rtol=1e-5), \
        f"max abs err {jnp.max(jnp.abs(out3 - ref3))}"

    print("KERNEL_OK")
</pallas_src>

<mosaic_0001>
module attributes {stable_mosaic.version = 11 : i64} {
  func.func @_mlp_kernel(%arg0: i32, %arg1: memref<8x64xf32, #tpu.memory_space<vmem>>, %arg2: memref<8x1xf32, #tpu.memory_space<vmem>>, %arg3: memref<64x64xf32, #tpu.memory_space<vmem>>, %arg4: memref<1x64xf32, #tpu.memory_space<vmem>>, %arg5: memref<1x64xf32, #tpu.memory_space<vmem>>, %arg6: memref<64x16xf32, #tpu.memory_space<vmem>>, %arg7: memref<1x16xf32, #tpu.memory_space<vmem>>, %arg8: memref<8x16xf32, #tpu.memory_space<vmem>>) attributes {dimension_semantics = [#tpu.dimension_semantics<parallel>], iteration_bounds = array<i64: 1>, scalar_prefetch = 0 : i64, scratch_operands = 0 : i64, tpu.core_type = #tpu.core_type<tc>, window_params = [{transform_indices = @transform_0, window_bounds = array<i64: 8, 64>}, {transform_indices = @transform_1, window_bounds = array<i64: 8, 1>}, {pipeline_mode = #tpu.pipeline_mode<synchronous>, transform_indices = @transform_2, window_bounds = array<i64: 64, 64>}, {pipeline_mode = #tpu.pipeline_mode<synchronous>, transform_indices = @transform_3, window_bounds = array<i64: 1, 64>}, {pipeline_mode = #tpu.pipeline_mode<synchronous>, transform_indices = @transform_4, window_bounds = array<i64: 1, 64>}, {pipeline_mode = #tpu.pipeline_mode<synchronous>, transform_indices = @transform_5, window_bounds = array<i64: 64, 16>}, {pipeline_mode = #tpu.pipeline_mode<synchronous>, transform_indices = @transform_6, window_bounds = array<i64: 1, 16>}, {transform_indices = @transform_7, window_bounds = array<i64: 8, 16>}]} {
    %c0 = arith.constant 0 : index
    %c0_0 = arith.constant 0 : index
    %0 = vector.load %arg1[%c0, %c0_0] : memref<8x64xf32, #tpu.memory_space<vmem>>, vector<8x64xf32>
    %c0_1 = arith.constant 0 : index
    %c0_2 = arith.constant 0 : index
    %1 = vector.load %arg3[%c0_1, %c0_2] : memref<64x64xf32, #tpu.memory_space<vmem>>, vector<64x64xf32>
    %cst = arith.constant dense<0.000000e+00> : vector<8x64xf32>
    %2 = tpu.matmul %0, %1, %cst {dimension_numbers = #tpu.dot_dimension_numbers<[1], [0], [0], [1], [0, 0, 1, 1], [], []>} : vector<8x64xf32>, vector<64x64xf32>, vector<8x64xf32> -> vector<8x64xf32>
    %c0_3 = arith.constant 0 : index
    %c0_4 = arith.constant 0 : index
    %3 = vector.load %arg2[%c0_3, %c0_4] : memref<8x1xf32, #tpu.memory_space<vmem>>, vector<8x1xf32>
    %c0_5 = arith.constant 0 : index
    %c0_6 = arith.constant 0 : index
    %4 = vector.load %arg4[%c0_5, %c0_6] : memref<1x64xf32, #tpu.memory_space<vmem>>, vector<1x64xf32>
    %5 = vector.broadcast %3 : vector<8x1xf32> to vector<8x64xf32>
    %6 = vector.broadcast %4 : vector<1x64xf32> to vector<8x64xf32>
    %7 = arith.mulf %5, %6 : vector<8x64xf32>
    %8 = arith.addf %2, %7 : vector<8x64xf32>
    %c0_7 = arith.constant 0 : index
    %c0_8 = arith.constant 0 : index
    %9 = vector.load %arg5[%c0_7, %c0_8] : memref<1x64xf32, #tpu.memory_space<vmem>>, vector<1x64xf32>
    %10 = vector.broadcast %9 : vector<1x64xf32> to vector<8x64xf32>
    %11 = arith.addf %8, %10 : vector<8x64xf32>
    %cst_9 = arith.constant 0.000000e+00 : f32
    %12 = vector.broadcast %cst_9 : f32 to vector<8x64xf32>
    %13 = arith.maximumf %11, %12 : vector<8x64xf32>
    %c0_10 = arith.constant 0 : index
    %c0_11 = arith.constant 0 : index
    %14 = vector.load %arg6[%c0_10, %c0_11] : memref<64x16xf32, #tpu.memory_space<vmem>>, vector<64x16xf32>
    %cst_12 = arith.constant dense<0.000000e+00> : vector<8x16xf32>
    %15 = tpu.matmul %13, %14, %cst_12 {dimension_numbers = #tpu.dot_dimension_numbers<[1], [0], [0], [1], [0, 0, 1, 1], [], []>} : vector<8x64xf32>, vector<64x16xf32>, vector<8x16xf32> -> vector<8x16xf32>
    %c0_13 = arith.constant 0 : index
    %c0_14 = arith.constant 0 : index
    %16 = vector.load %arg7[%c0_13, %c0_14] : memref<1x16xf32, #tpu.memory_space<vmem>>, vector<1x16xf32>
    %17 = vector.broadcast %16 : vector<1x16xf32> to vector<8x16xf32>
    %18 = arith.addf %15, %17 : vector<8x16xf32>
    %c0_15 = arith.constant 0 : index
    %c0_16 = arith.constant 0 : index
    %19 = vector.load %arg8[%c0_15, %c0_16] : memref<8x16xf32, #tpu.memory_space<vmem>>, vector<8x16xf32>
    tpu.vector_store %arg8[%c0_15, %c0_16], %18 {strides = array<i32>} : memref<8x16xf32, #tpu.memory_space<vmem>>, vector<8x16xf32>,
    return
  }
  func.func @transform_0(%arg0: i32) -> (i32, i32) {
    %c0_i32 = arith.constant 0 : i32
    %c0_i32_0 = arith.constant 0 : i32
    return %arg0, %c0_i32 : i32, i32
  }
  func.func @transform_1(%arg0: i32) -> (i32, i32) {
    %c0_i32 = arith.constant 0 : i32
    %c0_i32_0 = arith.constant 0 : i32
    return %arg0, %c0_i32 : i32, i32
  }
  func.func @transform_2(%arg0: i32) -> (i32, i32) {
    %c0_i32 = arith.constant 0 : i32
    %c0_i32_0 = arith.constant 0 : i32
    %c0_i32_1 = arith.constant 0 : i32
    return %c0_i32, %c0_i32_0 : i32, i32
  }
  func.func @transform_3(%arg0: i32) -> (i32, i32) {
    %c0_i32 = arith.constant 0 : i32
    %c0_i32_0 = arith.constant 0 : i32
    %c0_i32_1 = arith.constant 0 : i32
    return %c0_i32, %c0_i32_0 : i32, i32
  }
  func.func @transform_4(%arg0: i32) -> (i32, i32) {
    %c0_i32 = arith.constant 0 : i32
    %c0_i32_0 = arith.constant 0 : i32
    %c0_i32_1 = arith.constant 0 : i32
    return %c0_i32, %c0_i32_0 : i32, i32
  }
  func.func @transform_5(%arg0: i32) -> (i32, i32) {
    %c0_i32 = arith.constant 0 : i32
    %c0_i32_0 = arith.constant 0 : i32
    %c0_i32_1 = arith.constant 0 : i32
    return %c0_i32, %c0_i32_0 : i32, i32
  }
  func.func @transform_6(%arg0: i32) -> (i32, i32) {
    %c0_i32 = arith.constant 0 : i32
    %c0_i32_0 = arith.constant 0 : i32
    %c0_i32_1 = arith.constant 0 : i32
    return %c0_i32, %c0_i32_0 : i32, i32
  }
  func.func @transform_7(%arg0: i32) -> (i32, i32) {
    %c0_i32 = arith.constant 0 : i32
    %c0_i32_0 = arith.constant 0 : i32
    return %arg0, %c0_i32 : i32, i32
  }
}

</mosaic_0001>

<bundles_post_ra>
// kernel: tpu_custom_call.1
= control target key start
LH: loop header
LB: loop body
LE: loop exit
PB: predicated region body
PF: predicated region fallthrough
CT: control target
= control target key end

     0   :  { %v325_v1 = vmov 0.0   ;;  %vm326_vm0 = vmmov 0   ;;  %v327_v3 = vmov 0   ;;  %s439_s0 = inlined_call_operand.vmem [shape: f32[8,64], index: 0, kind: input, shape index: {}]   ;;  %s440_s1 = inlined_call_operand.vmem [shape: f32[8,1], index: 1, kind: input, shape index: {}]   ;;  %s441_s2 = inlined_call_operand.vmem [shape: f32[64,64], index: 2, kind: input, shape index: {}]   ;;  %s442_s3 = inlined_call_operand.vmem [shape: f32[1,64], index: 3, kind: input, shape index: {}]   ;;  %s443_s4 = inlined_call_operand.vmem [shape: f32[1,64], index: 4, kind: input, shape index: {}]   ;;  %s444_s5 = inlined_call_operand.vmem [shape: f32[64,16], index: 5, kind: input, shape index: {}]   ;;  %s445_s6 = inlined_call_operand.vmem [shape: f32[1,16], index: 6, kind: input, shape index: {}]   ;;  %s446_s7 = inlined_call_operand.hbm [shape: f32[8,16], index: 7, kind: output, shape index: {}]  }
   0x1   :  { %v35_v0 = vld [vmem:[%s441_s2 + $0x38] sm:$0xff]  ;;  %260 = vmatprep.subr.mxu0 %v325_v1  ;;  %v34_v2 = vld [vmem:[%s441_s2 + $0x30] sm:$0xff]  ;;  %276 = vmatprep.mubr.msk.f32.mxu0 %vm326_vm0, %v325_v1  ;;  %v33_v4 = vld [vmem:[%s441_s2 + $0x28] sm:$0xff] }
   0x2   :  { %261 = vmatpush3.msra.mxu0 %v35_v0  ;;  %302 = vset.pattern.permute.xlu0 %v327_v3  ;;  %v36_v5 = vld [vmem:[%s440_s1] sm:$0xff]  ;;  %v140_v6 = vld [vmem:[%s444_s5 + $0x38] sm:$0xff]  ;;  %v139_v7 = vld [vmem:[%s444_s5 + $0x30] sm:$0xff] }
   0x3   :  { %262 = vmatprep.subr.mxu0 %v325_v1  ;;  %279 = vmatprep.subr.mxu1 %v325_v1  ;;  %v32_v8 = vld [vmem:[%s441_s2 + $0x20] sm:$0xff] }
   0x4   :  { %263 = vmatpush3.msra.mxu0 %v34_v2  ;;  %40 = vperm.xlu0 %302, %v36_v5  }
   0x5   :  { %264 = vmatprep.subr.mxu0 %v325_v1  ;;  %280 = vmatpush3.msra.mxu1 %v140_v6 }
   0x6   :  { %12 = vsyncpa [#allocation3], 0  ;;  %265 = vmatpush3.msra.mxu0 %v33_v4  ;;  %281 = vmatprep.subr.mxu1 %v325_v1  ;;  %v138_v9 = vld [vmem:[%s444_s5 + $0x28] sm:$0xff]  ;;  %v31_v10 = vld [vmem:[%s441_s2 + $0x18] sm:$0xff]  ;;  %vm50_vm1 = vcmask 523264   ;;  %s328_s15 = smov [#allocation2]  }
   0x7   :  { %266 = vmatprep.subr.mxu0 %v325_v1  ;;  %282 = vmatpush3.msra.mxu1 %v139_v7  ;;  %v137_v11 = vld [vmem:[%s444_s5 + $0x20] sm:$0xff]  ;;  %v30_v12 = vld [vmem:[%s441_s2 + $0x10] sm:$0xff]  ;;  %v29_v13 = vld [vmem:[%s441_s2 + $0x8] sm:$0xff]  ;;  %s229_s16 = sshll.u32 %s328_s15, 4  ;;  %vm221_vm2 = vcmask 130048   ;;  %s230_s16 = int_to_ptr.vmem [resolvable:$true] %s229_s16 }
   0x8   :  { %267 = vmatpush3.msra.mxu0 %v32_v8  ;;  %283 = vmatprep.subr.mxu1 %v325_v1  ;;  %v28_v14 = vld [vmem:[%s441_s2] sm:$0xff]  ;;  %v136_v16 = vld [vmem:[%s444_s5 + $0x18] sm:$0xff]  ;;  %v135_v17 = vld [vmem:[%s444_s5 + $0x10] sm:$0xff]  ;;  %p308_p1 = scmp.lt.s32.totalorder %s230_s16, %s230_s16 }
   0x9   :  { %268 = vmatprep.subr.mxu0 %v325_v1  ;;  %284 = vmatpush3.msra.mxu1 %v138_v9  ;;  %v27_v15 = vld [vmem:[%s439_s0] sm:$0xff]  ;;  %v134_v18 = vld [vmem:[%s444_s5 + $0x8] sm:$0xff] }
   0xa   :  { %269 = vmatpush3.msra.mxu0 %v31_v10  ;;  %285 = vmatprep.subr.mxu1 %v325_v1  ;;  %v133_v19 = vld [vmem:[%s444_s5] sm:$0xff] }
   0xb   :  { %270 = vmatprep.subr.mxu0 %v325_v1  ;;  %286 = vmatpush3.msra.mxu1 %v137_v11  ;;  %v237_v20 = vld [vmem:[%s442_s3] ss:$0 sm:$0xff]  ;;  %s303_s3 = scalar_lea.vmem %s230_s16, 128 }
   0xc   :  { %271 = vmatpush3.msra.mxu0 %v30_v12  ;;  %287 = vmatprep.subr.mxu1 %v325_v1  ;;  %v239_v24 = vld [vmem:[%s443_s4] ss:$0 sm:$0xff]  ;;  %p304_p0 = scmp.ne.s32.totalorder %s230_s16, %s303_s3  ;;  %p309_p2 = scmp.lt.s32.totalorder %s303_s3, %s303_s3 }
   0xd   :  { %272 = vmatprep.subr.mxu0 %v325_v1  ;;  %295 = vmatprep.mubr.msk.f32.mxu1 %vm326_vm0, %v325_v1  ;;  %v240_v29 = vld [vmem:[%s445_s6] ss:$0 sm:$0xff] }
   0xe   :  { %273 = vmatpush3.msra.mxu0 %v29_v13  ;;  %288 = vmatpush3.msra.mxu1 %v136_v16  ;;  %p310_p3 = por %p309_p2, %p308_p1 }
   0xf   :  { %274 = vmatprep.subr.mxu0 %v325_v1  ;;  %289 = vmatprep.subr.mxu1 %v325_v1 }
  0x10   :  { %275 = vmatpush3.msra.mxu0 %v28_v14  ;;  %290 = vmatpush3.msra.mxu1 %v135_v17  ;;  %p311_p4 = pnand %p310_p3, %p304_p0 }
  0x11   :  { %277 = vmatmul.mubr.msk.f32.vlgmr.msra.gmra.mxu0 %vm50_vm1, %v27_v15  ;;  %291 = vmatprep.subr.mxu1 %v325_v1 }
  0x12   :  { %292 = vmatpush3.msra.mxu1 %v134_v18 }
  0x13   :  { %293 = vmatprep.subr.mxu1 %v325_v1 }
  0x14   :  { %294 = vmatpush3.msra.mxu1 %v133_v19 }
  0x7f   :  { %v41_v21 = vpop.permute.xlu0 %40 }
  0x80   :  { %v49_v22 = vmul.f32 %v237_v20, %v41_v21 }
  0xd1   :  { %v120_v23 = vpop.f32.mrf.mxu0 }
  0xd2   :  { %v121_v25 = vadd.f32 %v120_v23, %v49_v22 }
  0xd3   :  { %v278_v26 = vpop.f32.mrf.mxu0 }
  0xd4   :  { %v131_v27 = vadd.f32 %v239_v24, %v121_v25 }
  0xd6   :  { %v132_v28 = vmax.f32 %v131_v27, 0.0 }
  0xd8   :  { %296 = vmatmul.mubr.msk.f32.vlgmr.msra.gmra.mxu1 %vm50_vm1, %v132_v28 }
 0x198   :  { %v217_v30 = vpop.f32.mrf.mxu1 }
 0x199   :  { %v218_v31 = vadd.f32 %v240_v29, %v217_v30 }
 0x19a   :  { %v297_v32 = vpop.f32.mrf.mxu1 }
 0x19b   :  { %222 = vst.msk [vmem:[#allocation2] sm:$0xff] %vm221_vm2, %v218_v31 }
 0x19c   :  { %314 = shalt.err (!%p311_p4)
}
 0x19d   :  { %232 = dma.vmem_to_hbm [thread:$0]  %s230_s16, 128, %s446_s7, [#allocation3]  }
 0x19e   :  { %323 = dma.done.wait [#allocation3], 128  }
 0x19f   :  { %324 = vsyncadd [#allocation3], 4294967168 }
 0x1a0   :  { %236 = vsyncpa [#allocation3], 1 }

</bundles_post_ra>
